<compile_context>
chip_gen: v5e
topology: v5e:2x2
jax: 0.10.0
libtpu: 0.0.40
codegen_flags: <defaults>
</compile_context>

<pallas_src>
import jax
import jax.numpy as jnp
from jax.experimental import pallas as pl
from jax.experimental.pallas import tpu as pltpu


def _round_up(n, m):
    return ((n + m - 1) // m) * m


def make_actor_kernel(action_high, action_low):
    """Build the fused Actor forward kernel with baked-in action bounds."""
    scale = 0.5 * (float(action_high) - float(action_low))
    offset = 0.5 * (float(action_high) + float(action_low))

    def actor_kernel(x_ref, w1_ref, b1_ref, w2_ref, b2_ref, wo_ref, bo_ref,
                     o_ref):
        cdt = w1_ref.dtype  # matmul-input dtype (bf16 on the fast path)

        # layer 1: Linear + ReLU  (x is already bf16; f32 accumulate)
        h1 = jnp.dot(x_ref[...], w1_ref[...],
                     preferred_element_type=jnp.float32) + b1_ref[...]
        h1 = jnp.maximum(h1, 0.0)

        # layer 2: Linear + ReLU
        h2 = jnp.dot(h1.astype(cdt), w2_ref[...],
                     preferred_element_type=jnp.float32) + b2_ref[...]
        h2 = jnp.maximum(h2, 0.0)

        # output layer: Linear + Tanh
        z = jnp.dot(h2.astype(cdt), wo_ref[...],
                    preferred_element_type=jnp.float32) + bo_ref[...]
        o_tanh = jnp.tanh(z)

        # exact PyTorch formula: 0.5 * (o_tanh*(high-low) - (high+low))
        o_ref[...] = (o_tanh * scale - offset).astype(o_ref.dtype)

    return actor_kernel


def actor_forward(x, params, action_high, action_low, *,
                  tile_b=4096, compute_dtype=jnp.bfloat16):
    """Fused Actor forward pass.

    x:      (B, I) float32
    params: dict with w1 (I,L1), b1 (1,L1), w2 (L1,L2), b2 (1,L2),
            wo (L2,O), bo (1,O)  — weights stored transposed to (in, out).
    """
    B, I = x.shape
    L1 = params["w1"].shape[1]
    L2 = params["w2"].shape[1]
    O = params["wo"].shape[1]

    # Hidden dims lane-dense (multiples of 128); input/output feature dims are
    # left at their native width (full-extent blocks are legal and cheaper).
    L1_p = _round_up(L1, 128)
    L2_p = _round_up(L2, 128)

    # Batch tile: big enough to amortize per-grid-step overhead, but capped at
    # ~half the batch so there are >=2 "parallel" grid steps for megacore.
    half_b = _round_up(max((B + 1) // 2, 1), 8)
    tb = max(8, min(_round_up(int(tile_b), 8), half_b))
    B_p = _round_up(B, tb)

    # bf16 cast (fused with batch padding when needed) — single pass over x.
    x_p = x.astype(compute_dtype)
    if B_p != B:
        x_p = jnp.pad(x_p, ((0, B_p - B), (0, 0)))

    def pad2(a, rows, cols, dtype):
        a = a.astype(dtype)
        return jnp.pad(a, ((0, rows - a.shape[0]), (0, cols - a.shape[1])))

    w1 = pad2(params["w1"], I, L1_p, compute_dtype)     # K dim unpadded
    w2 = pad2(params["w2"], L1_p, L2_p, compute_dtype)
    wo = pad2(params["wo"], L2_p, O, compute_dtype)     # N dim unpadded
    b1 = pad2(params["b1"], 1, L1_p, jnp.float32)
    b2 = pad2(params["b2"], 1, L2_p, jnp.float32)
    bo = params["bo"].astype(jnp.float32)

    grid = (B_p // tb,)
    tiled = lambda i: (i, 0)   # x / out blocks march down the batch
    const = lambda i: (0, 0)   # weights & biases stay resident in VMEM

    flops = 2 * B_p * (I * L1_p + L1_p * L2_p + L2_p * O)
    bytes_accessed = (x_p.size * x_p.dtype.itemsize + B_p * O * 4
                      + (w1.size + w2.size + wo.size) * w1.dtype.itemsize
                      + (b1.size + b2.size + bo.size) * 4)

    out = pl.pallas_call(
        make_actor_kernel(action_high, action_low),
        out_shape=jax.ShapeDtypeStruct((B_p, O), jnp.float32),
        grid=grid,
        in_specs=[
            pl.BlockSpec((tb, I), tiled),       # x (bf16, native width)
            pl.BlockSpec((I, L1_p), const),     # w1
            pl.BlockSpec((1, L1_p), const),     # b1
            pl.BlockSpec((L1_p, L2_p), const),  # w2
            pl.BlockSpec((1, L2_p), const),     # b2
            pl.BlockSpec((L2_p, O), const),     # wo (native output width)
            pl.BlockSpec((1, O), const),        # bo
        ],
        out_specs=pl.BlockSpec((tb, O), tiled),  # narrow out block: no 16x pad
        compiler_params=pltpu.CompilerParams(
            dimension_semantics=("parallel",),
            vmem_limit_bytes=48 * 1024 * 1024,
        ),
        cost_estimate=pl.CostEstimate(
            flops=flops,
            transcendentals=B_p * O,
            bytes_accessed=bytes_accessed,
        ),
    )(x_p, w1, b1, w2, b2, wo, bo)

    return out[:B, :O]


def actor_reference(x, params, action_high, action_low, compute_dtype=None):
    """Pure-JAX reference. If compute_dtype is set, matmul inputs are cast to
    it (mirrors the kernel's bf16 MXU path); accumulation stays f32."""
    cast = (lambda a: a) if compute_dtype is None else (
        lambda a: a.astype(compute_dtype))
    h1 = jnp.maximum(
        jnp.dot(cast(x), cast(params["w1"]),
                preferred_element_type=jnp.float32) + params["b1"], 0.0)
    h2 = jnp.maximum(
        jnp.dot(cast(h1), cast(params["w2"]),
                preferred_element_type=jnp.float32) + params["b2"], 0.0)
    o_tanh = jnp.tanh(
        jnp.dot(cast(h2), cast(params["wo"]),
                preferred_element_type=jnp.float32) + params["bo"])
    return 0.5 * (o_tanh * (action_high - action_low)
                  - (action_high + action_low))


def init_params(key, i_shape, l1_shape, l2_shape, o_shape):
    """Synthetic init mirroring nn.Linear parameter shapes.

    PyTorch stores weight as (out, in); we store the transpose (in, out) so
    the kernel computes x @ W directly. Biases are kept as (1, out) rows.
    """
    ks = jax.random.split(key, 6)

    def uniform(k, shape, fan_in):
        bound = 1.0 / jnp.sqrt(fan_in)
        return jax.random.uniform(k, shape, jnp.float32, -bound, bound)

    return {
        "w1": uniform(ks[0], (i_shape, l1_shape), i_shape),
        "b1": uniform(ks[1], (1, l1_shape), i_shape),
        "w2": uniform(ks[2], (l1_shape, l2_shape), l1_shape),
        "b2": uniform(ks[3], (1, l2_shape), l1_shape),
        "wo": uniform(ks[4], (l2_shape, o_shape), l2_shape),
        "bo": uniform(ks[5], (1, o_shape), l2_shape),
    }


if __name__ == "__main__":
    # Small shapes consistent with the module's network_init dict.
    batch = 8
    i_shape, l1_shape, l2_shape, o_shape = 32, 64, 64, 8
    # Asymmetric bounds to exercise the exact PyTorch affine (incl. its sign).
    action_high, action_low = 2.0, -1.0

    key = jax.random.PRNGKey(0)
    key_x, key_p = jax.random.split(key)

    x = jax.random.normal(key_x, (batch, i_shape), jnp.float32)
    params = init_params(key_p, i_shape, l1_shape, l2_shape, o_shape)

    out = actor_forward(x, params, action_high, action_low)
    jax.block_until_ready(out)
    assert out.shape == (batch, o_shape)

    # Tight check vs. a reference that uses the same bf16 matmul inputs.
    ref_matched = actor_reference(x, params, action_high, action_low,
                                  compute_dtype=jnp.bfloat16)
    assert jnp.allclose(out, ref_matched, atol=2e-3), \
        "mismatch vs bf16-matched reference"

    # Loose sanity check vs. the full-f32 module semantics (bounds the bf16
    # quantization error of the fast path).
    ref_f32 = actor_reference(x, params, action_high, action_low)
    assert jnp.allclose(out, ref_f32, atol=1e-1), "mismatch vs f32 reference"

    # TODO(synk): optimizer/update()/loss_history are training-side state with
    # no forward-pass Pallas equivalent; only forward/predict is implemented.
    print("KERNEL_OK")
</pallas_src>

<mosaic_0001>
module attributes {stable_mosaic.version = 11 : i64} {
  func.func @actor_kernel(%arg0: i32, %arg1: memref<8x32xbf16, #tpu.memory_space<vmem>>, %arg2: memref<32x128xbf16, #tpu.memory_space<vmem>>, %arg3: memref<1x128xf32, #tpu.memory_space<vmem>>, %arg4: memref<128x128xbf16, #tpu.memory_space<vmem>>, %arg5: memref<1x128xf32, #tpu.memory_space<vmem>>, %arg6: memref<128x8xbf16, #tpu.memory_space<vmem>>, %arg7: memref<1x8xf32, #tpu.memory_space<vmem>>, %arg8: memref<8x8xf32, #tpu.memory_space<vmem>>) attributes {dimension_semantics = [#tpu.dimension_semantics<parallel>], iteration_bounds = array<i64: 1>, scalar_prefetch = 0 : i64, scratch_operands = 0 : i64, tpu.core_type = #tpu.core_type<tc>, window_params = [{transform_indices = @transform_0, window_bounds = array<i64: 8, 32>}, {pipeline_mode = #tpu.pipeline_mode<synchronous>, transform_indices = @transform_1, window_bounds = array<i64: 32, 128>}, {pipeline_mode = #tpu.pipeline_mode<synchronous>, transform_indices = @transform_2, window_bounds = array<i64: 1, 128>}, {pipeline_mode = #tpu.pipeline_mode<synchronous>, transform_indices = @transform_3, window_bounds = array<i64: 128, 128>}, {pipeline_mode = #tpu.pipeline_mode<synchronous>, transform_indices = @transform_4, window_bounds = array<i64: 1, 128>}, {pipeline_mode = #tpu.pipeline_mode<synchronous>, transform_indices = @transform_5, window_bounds = array<i64: 128, 8>}, {pipeline_mode = #tpu.pipeline_mode<synchronous>, transform_indices = @transform_6, window_bounds = array<i64: 1, 8>}, {transform_indices = @transform_7, window_bounds = array<i64: 8, 8>}]} {
    %c0 = arith.constant 0 : index
    %c0_0 = arith.constant 0 : index
    %0 = vector.load %arg1[%c0, %c0_0] : memref<8x32xbf16, #tpu.memory_space<vmem>>, vector<8x32xbf16>
    %c0_1 = arith.constant 0 : index
    %c0_2 = arith.constant 0 : index
    %1 = vector.load %arg2[%c0_1, %c0_2] : memref<32x128xbf16, #tpu.memory_space<vmem>>, vector<32x128xbf16>
    %cst = arith.constant dense<0.000000e+00> : vector<8x128xf32>
    %2 = tpu.matmul %0, %1, %cst {dimension_numbers = #tpu.dot_dimension_numbers<[1], [0], [0], [1], [0, 0, 1, 1], [], []>} : vector<8x32xbf16>, vector<32x128xbf16>, vector<8x128xf32> -> vector<8x128xf32>
    %c0_3 = arith.constant 0 : index
    %c0_4 = arith.constant 0 : index
    %3 = vector.load %arg3[%c0_3, %c0_4] : memref<1x128xf32, #tpu.memory_space<vmem>>, vector<1x128xf32>
    %4 = vector.broadcast %3 : vector<1x128xf32> to vector<8x128xf32>
    %5 = arith.addf %2, %4 : vector<8x128xf32>
    %cst_5 = arith.constant 0.000000e+00 : f32
    %6 = vector.broadcast %cst_5 : f32 to vector<8x128xf32>
    %7 = arith.maximumf %5, %6 : vector<8x128xf32>
    %8 = arith.truncf %7 : vector<8x128xf32> to vector<8x128xbf16>
    %c0_6 = arith.constant 0 : index
    %c0_7 = arith.constant 0 : index
    %9 = vector.load %arg4[%c0_6, %c0_7] : memref<128x128xbf16, #tpu.memory_space<vmem>>, vector<128x128xbf16>
    %cst_8 = arith.constant dense<0.000000e+00> : vector<8x128xf32>
    %10 = tpu.matmul %8, %9, %cst_8 {dimension_numbers = #tpu.dot_dimension_numbers<[1], [0], [0], [1], [0, 0, 1, 1], [], []>} : vector<8x128xbf16>, vector<128x128xbf16>, vector<8x128xf32> -> vector<8x128xf32>
    %c0_9 = arith.constant 0 : index
    %c0_10 = arith.constant 0 : index
    %11 = vector.load %arg5[%c0_9, %c0_10] : memref<1x128xf32, #tpu.memory_space<vmem>>, vector<1x128xf32>
    %12 = vector.broadcast %11 : vector<1x128xf32> to vector<8x128xf32>
    %13 = arith.addf %10, %12 : vector<8x128xf32>
    %cst_11 = arith.constant 0.000000e+00 : f32
    %14 = vector.broadcast %cst_11 : f32 to vector<8x128xf32>
    %15 = arith.maximumf %13, %14 : vector<8x128xf32>
    %16 = arith.truncf %15 : vector<8x128xf32> to vector<8x128xbf16>
    %c0_12 = arith.constant 0 : index
    %c0_13 = arith.constant 0 : index
    %17 = vector.load %arg6[%c0_12, %c0_13] : memref<128x8xbf16, #tpu.memory_space<vmem>>, vector<128x8xbf16>
    %cst_14 = arith.constant dense<0.000000e+00> : vector<8x8xf32>
    %18 = tpu.matmul %16, %17, %cst_14 {dimension_numbers = #tpu.dot_dimension_numbers<[1], [0], [0], [1], [0, 0, 1, 1], [], []>} : vector<8x128xbf16>, vector<128x8xbf16>, vector<8x8xf32> -> vector<8x8xf32>
    %c0_15 = arith.constant 0 : index
    %c0_16 = arith.constant 0 : index
    %19 = vector.load %arg7[%c0_15, %c0_16] : memref<1x8xf32, #tpu.memory_space<vmem>>, vector<1x8xf32>
    %20 = vector.broadcast %19 : vector<1x8xf32> to vector<8x8xf32>
    %21 = arith.addf %18, %20 : vector<8x8xf32>
    %22 = math.tanh %21 : vector<8x8xf32>
    %cst_17 = arith.constant 1.500000e+00 : f32
    %23 = vector.broadcast %cst_17 : f32 to vector<8x8xf32>
    %24 = arith.mulf %22, %23 : vector<8x8xf32>
    %cst_18 = arith.constant 5.000000e-01 : f32
    %25 = vector.broadcast %cst_18 : f32 to vector<8x8xf32>
    %26 = arith.subf %24, %25 : vector<8x8xf32>
    %c0_19 = arith.constant 0 : index
    %c0_20 = arith.constant 0 : index
    %27 = vector.load %arg8[%c0_19, %c0_20] : memref<8x8xf32, #tpu.memory_space<vmem>>, vector<8x8xf32>
    tpu.vector_store %arg8[%c0_19, %c0_20], %26 {strides = array<i32>} : memref<8x8xf32, #tpu.memory_space<vmem>>, vector<8x8xf32>,
    return
  }
  func.func @transform_0(%arg0: i32) -> (i32, i32) {
    %c0_i32 = arith.constant 0 : i32
    %c0_i32_0 = arith.constant 0 : i32
    return %arg0, %c0_i32 : i32, i32
  }
  func.func @transform_1(%arg0: i32) -> (i32, i32) {
    %c0_i32 = arith.constant 0 : i32
    %c0_i32_0 = arith.constant 0 : i32
    %c0_i32_1 = arith.constant 0 : i32
    return %c0_i32, %c0_i32_0 : i32, i32
  }
  func.func @transform_2(%arg0: i32) -> (i32, i32) {
    %c0_i32 = arith.constant 0 : i32
    %c0_i32_0 = arith.constant 0 : i32
    %c0_i32_1 = arith.constant 0 : i32
    return %c0_i32, %c0_i32_0 : i32, i32
  }
  func.func @transform_3(%arg0: i32) -> (i32, i32) {
    %c0_i32 = arith.constant 0 : i32
    %c0_i32_0 = arith.constant 0 : i32
    %c0_i32_1 = arith.constant 0 : i32
    return %c0_i32, %c0_i32_0 : i32, i32
  }
  func.func @transform_4(%arg0: i32) -> (i32, i32) {
    %c0_i32 = arith.constant 0 : i32
    %c0_i32_0 = arith.constant 0 : i32
    %c0_i32_1 = arith.constant 0 : i32
    return %c0_i32, %c0_i32_0 : i32, i32
  }
  func.func @transform_5(%arg0: i32) -> (i32, i32) {
    %c0_i32 = arith.constant 0 : i32
    %c0_i32_0 = arith.constant 0 : i32
    %c0_i32_1 = arith.constant 0 : i32
    return %c0_i32, %c0_i32_0 : i32, i32
  }
  func.func @transform_6(%arg0: i32) -> (i32, i32) {
    %c0_i32 = arith.constant 0 : i32
    %c0_i32_0 = arith.constant 0 : i32
    %c0_i32_1 = arith.constant 0 : i32
    return %c0_i32, %c0_i32_0 : i32, i32
  }
  func.func @transform_7(%arg0: i32) -> (i32, i32) {
    %c0_i32 = arith.constant 0 : i32
    %c0_i32_0 = arith.constant 0 : i32
    return %arg0, %c0_i32 : i32, i32
  }
}

</mosaic_0001>

<bundles_post_ra>
// kernel: tpu_custom_call.1
= control target key start
LH: loop header
LB: loop body
LE: loop exit
PB: predicated region body
PF: predicated region fallthrough
CT: control target
= control target key end

     0   :  { %12 = vsyncpa [#allocation3], 0  ;;  %s615_s0 = inlined_call_operand.vmem [shape: bf16[8,32], index: 0, kind: input, shape index: {}]   ;;  %s616_s1 = inlined_call_operand.hbm [shape: bf16[32,128], index: 1, kind: input, shape index: {}]   ;;  %s617_s2 = inlined_call_operand.hbm [shape: f32[1,128], index: 2, kind: input, shape index: {}]   ;;  %s618_s3 = inlined_call_operand.vmem [shape: bf16[128,128], index: 3, kind: input, shape index: {}]   ;;  %s619_s4 = inlined_call_operand.hbm [shape: f32[1,128], index: 4, kind: input, shape index: {}]   ;;  %s620_s5 = inlined_call_operand.vmem [shape: bf16[128,8], index: 5, kind: input, shape index: {}]   ;;  %s621_s6 = inlined_call_operand.vmem [shape: f32[1,8], index: 6, kind: input, shape index: {}]   ;;  %s622_s7 = inlined_call_operand.hbm [shape: f32[8,8], index: 7, kind: output, shape index: {}]  }
   0x1   :  { %13 = vsyncpa [#allocation6], 0  ;;  %s35_s26 = sshll.u32 %s617_s2, 4  ;;  %s36_s26 = int_to_ptr.hbm [resolvable:$true] %s35_s26 }
   0x2   :  { %14 = vsyncpa [#allocation4], 0  ;;  %s503_s27 = smov [#allocation5]   ;;  %s21_s8 = sshll.u32 %s616_s1, 4  ;;  %s22_s8 = int_to_ptr.hbm [resolvable:$true] %s21_s8 }
   0x3   :  { %s37_s28 = sshll.u32 %s503_s27, 4  ;;  %s504_s9 = smov [#allocation2]   ;;  %s38_s28 = int_to_ptr.vmem [resolvable:$true] %s37_s28 }
   0x4   :  { %40 = dma.hbm_to_vmem [thread:$0]  %s36_s26, 16, %s38_s28, [#allocation6]  }
   0x5   :  { %s23_s10 = sshll.u32 %s504_s9, 4  ;;  %s505_s11 = smov 64   ;;  %s24_s10 = int_to_ptr.vmem [resolvable:$true] %s23_s10 }
   0x6   :  { %s506_s12 = smov 4   ;;  %s48_s2 = sshll.u32 %s619_s4, 4  ;;  %s49_s2 = int_to_ptr.hbm [resolvable:$true] %s48_s2 }
   0x7   :  { %29 = dma.hbm_to_vmem [thread:$0]  %s22_s8, 256, %s24_s10, [#allocation3], %s505_s11, %s505_s11, %s506_s12  }
   0x8   :  { %s507_s15 = smov [#allocation7]  }
   0x9   :  { %s50_s16 = sshll.u32 %s507_s15, 4  ;;  %s51_s16 = int_to_ptr.vmem [resolvable:$true] %s50_s16 }
   0xa   :  { %53 = dma.hbm_to_vmem [thread:$0]  %s49_s2, 16, %s51_s16, [#allocation6]  }
   0xb   :  { %497 = dma.done.wait [#allocation3], 256  }
   0xc   :  { %498 = vsyncadd [#allocation3], 4294967040 }
   0xd   :  { %499 = dma.done.wait [#allocation6], 32  }
   0xe   :  { %500 = vsyncadd [#allocation6], 4294967264  ;;  %v373_v0 = vld [vmem:[#allocation2 + $0x8] sm:$0xff]  ;;  %v381_v1 = vld [vmem:[%s618_s3 + $0x38] sm:$0xff]  ;;  %vm92_vm0 = vcmask 261120   ;;  %s508_s23 = smov [#allocation8]  }
   0xf   :  { %102 = vmatpush.bf16.msra.mxu0 %v373_v0  ;;  %v372_v2 = vld [vmem:[#allocation2] sm:$0xff]  ;;  %179 = vmatpush.bf16.msra.mxu1 %v381_v1  ;;  %v380_v3 = vld [vmem:[%s618_s3 + $0x30] sm:$0xff]  ;;  %v379_v5 = vld [vmem:[%s618_s3 + $0x28] sm:$0xff]  ;;  %s285_s24 = sshll.u32 %s508_s23, 4  ;;  %s287_s26 = sshll.u32 %s622_s7, 4  ;;  %vm278_vm1 = vcmask 64512   ;;  %s286_s24 = int_to_ptr.vmem [resolvable:$true] %s285_s24  ;;  %s288_s26 = int_to_ptr.hbm [resolvable:$true] %s287_s26 }
  0x10   :  { %v71_v4 = vld [vmem:[%s615_s0] sm:$0xf]  ;;  %v377_v7 = vld [vmem:[%s618_s3 + $0x18] sm:$0xff]  ;;  %v376_v8 = vld [vmem:[%s618_s3 + $0x10] sm:$0xff] }
  0x11   :  { %v378_v6 = vld [vmem:[%s618_s3 + $0x20] sm:$0xff]  ;;  %v375_v9 = vld [vmem:[%s618_s3 + $0x8] sm:$0xff]  ;;  %v389_v11 = vld [vmem:[%s620_s5 + $0x38] sm:$0xff] }
  0x12   :  { %v374_v10 = vld [vmem:[%s618_s3] sm:$0xff]  ;;  %262 = vmatpush.bf16.msra.mxu2 %v389_v11  ;;  %v388_v12 = vld [vmem:[%s620_s5 + $0x30] sm:$0xff]  ;;  %v387_v13 = vld [vmem:[%s620_s5 + $0x28] sm:$0xff] }
  0x13   :  { %103 = vmatpush.bf16.msra.mxu0 %v372_v2  ;;  %180 = vmatpush.bf16.msra.mxu1 %v380_v3  ;;  %v386_v14 = vld [vmem:[%s620_s5 + $0x20] sm:$0xff]  ;;  %v385_v15 = vld [vmem:[%s620_s5 + $0x18] sm:$0xff]  ;;  %v384_v16 = vld [vmem:[%s620_s5 + $0x10] sm:$0xff] }
  0x14   :  { %v396_v17 = vld [vmem:[#allocation5] ss:$0 sm:$0xff]  ;;  %v383_v23 = vld [vmem:[%s620_s5 + $0x8] sm:$0xff]  ;;  %v382_v24 = vld [vmem:[%s620_s5] sm:$0xff] }
  0x15   :  { %v397_v25 = vld [vmem:[#allocation7] ss:$0 sm:$0xff]  ;;  %v398_v31 = vld [vmem:[%s621_s6] ss:$0 sm:$0xff] }
  0x16   :  { %306 = vmatmul.msk.bf16.vlgmr.msra.gmra.mxu0 %vm92_vm0, %v71_v4  ;;  %263 = vmatpush.bf16.msra.mxu2 %v388_v12 }
  0x17   :  { %181 = vmatpush.bf16.msra.mxu1 %v379_v5 }
  0x1a   :  { %264 = vmatpush.bf16.msra.mxu2 %v387_v13 }
  0x1b   :  { %182 = vmatpush.bf16.msra.mxu1 %v378_v6 }
  0x1e   :  { %265 = vmatpush.bf16.msra.mxu2 %v386_v14 }
  0x1f   :  { %183 = vmatpush.bf16.msra.mxu1 %v377_v7 }
  0x22   :  { %266 = vmatpush.bf16.msra.mxu2 %v385_v15 }
  0x23   :  { %184 = vmatpush.bf16.msra.mxu1 %v376_v8 }
  0x26   :  { %267 = vmatpush.bf16.msra.mxu2 %v384_v16 }
  0x27   :  { %185 = vmatpush.bf16.msra.mxu1 %v375_v9 }
  0x2a   :  { %268 = vmatpush.bf16.msra.mxu2 %v383_v23 }
  0x2b   :  { %186 = vmatpush.bf16.msra.mxu1 %v374_v10 }
  0x2e   :  { %269 = vmatpush.bf16.msra.mxu2 %v382_v24 }
  0x93   :  { %v105_v18 = vpop.f32.mrf.mxu0 }
  0x94   :  { %v106_v19 = vadd.f32 %v396_v17, %v105_v18 }
  0x96   :  { %v109_v20 = vmax.f32 %v106_v19, 0.0 }
  0x98   :  { %v110_v21 = vpack.c.bf16 %v109_v20, %v109_v20 }
  0x9a   :  { %187 = vmatmul.bf16.vlgmr.msra.gmra.mxu1 %v110_v21 }
  0x9b   :  { %v107_v22 = vpop.f32.mrf.mxu0 }
 0x117   :  { %v188_v26 = vpop.f32.mrf.mxu1 }
 0x118   :  { %v189_v27 = vadd.f32 %v397_v25, %v188_v26 }
 0x11a   :  { %v192_v28 = vmax.f32 %v189_v27, 0.0 }
 0x11c   :  { %v193_v29 = vpack.c.bf16 %v192_v28, %v192_v28 }
 0x11e   :  { %270 = vmatmul.bf16.vlgmr.msra.gmra.mxu2 %v193_v29 }
 0x11f   :  { %v190_v30 = vpop.f32.mrf.mxu1 }
 0x1a1   :  { %v271_v32 = vpop.f32.mrf.mxu2 }
 0x1a2   :  { %v272_v33 = vadd.f32 %v398_v31, %v271_v32 }
 0x1a4   :  { %399 = vtanh.f32 %v272_v33 }
 0x1a9   :  { %v273_v34 = vpop.f32.mrf.mxu2 }
 0x1aa   :  { %v400_v35 = vpop.eup %399 }
 0x1ab   :  { %v276_v36 = vmul.f32 1.5, %v400_v35 }
 0x1ad   :  { %v371_v37 = vadd.f32 -0.5, %v276_v36 }
 0x1af   :  { %279 = vst.msk [vmem:[#allocation8] sm:$0xff] %vm278_vm1, %v371_v37 }
 0x1b0   :  { %290 = dma.vmem_to_hbm [thread:$0]  %s286_s24, 128, %s288_s26, [#allocation4]  }
 0x1b1   :  { %501 = dma.done.wait [#allocation4], 128  }
 0x1b2   :  { %502 = vsyncadd [#allocation4], 4294967168 }
 0x1b3   :  { %295 = vsyncpa [#allocation3], 1 }
 0x1b4   :  { %296 = vsyncpa [#allocation6], 1 }
 0x1b5   :  { %297 = vsyncpa [#allocation4], 1 }

</bundles_post_ra>
